<compile_context>
chip_gen: v5e
topology: v5e:2x2
jax: 0.10.0
libtpu: 0.0.40
codegen_flags: <defaults>
</compile_context>

<pallas_src>
import functools

import jax
import jax.numpy as jnp
from jax.experimental import pallas as pl
from jax.experimental.pallas import tpu as pltpu


def _qkv_proj_kernel(x_ref, wq_ref, wkt_ref, wv_ref, q_ref, kt_ref, v_ref, *, heads):
    # x_ref:  (1, tq, D)
    # wq_ref: (H, D, Dh)   (softmax scale already folded in on the host)
    # wkt_ref:(H, Dh, D)   (K weight pre-transposed so K comes out as (Dh, tq))
    # wv_ref: (H, D, Dh)
    # q_ref:  (1, H, tq, Dh)   kt_ref: (1, H, Dh, tq)   v_ref: (1, H, tq, Dh)
    x = x_ref[0]                                     # (tq, D)

    def project_head(h, carry):
        q = jnp.dot(x, wq_ref[h], preferred_element_type=jnp.float32)        # (tq, Dh)
        # NT dot_general (contract last dims) — same battle-tested pattern as the official
        # TPU flash kernel; produces K already transposed, once per tile per head, so the
        # hot kv loop in kernel B never transposes anything.
        kt = jax.lax.dot_general(wkt_ref[h], x, (((1,), (1,)), ((), ())),
                                 preferred_element_type=jnp.float32)         # (Dh, tq)
        v = jnp.dot(x, wv_ref[h], preferred_element_type=jnp.float32)        # (tq, Dh)
        q_ref[0, h] = q.astype(q_ref.dtype)
        kt_ref[0, h] = kt.astype(kt_ref.dtype)
        v_ref[0, h] = v.astype(v_ref.dtype)
        return carry

    if heads <= 8:                                   # static unroll for few heads
        for h in range(heads):
            project_head(h, 0)
    else:                                            # rolled loop bounds live ranges
        jax.lax.fori_loop(0, heads, project_head, 0)


def _flash_attn_kernel(q_ref, kt_ref, v_ref, wout_ref, bout_ref, o_ref,
                       m_ref, l_ref, acc_ref, *, heads):
    # q_ref:  (1, H, tq, Dh)   kt_ref: (1, H, Dh, tk)   v_ref: (1, H, tk, Dh)
    # wout_ref: (H, Dh, D)     bout_ref: (1, D)         o_ref: (1, tq, D)
    # scratch: m_ref / l_ref: (H, tq, 1) f32 ; acc_ref: (H, tq, Dh) f32
    kv_idx = pl.program_id(2)

    @pl.when(kv_idx == 0)
    def _init():
        m_ref[...] = jnp.full(m_ref.shape, -jnp.inf, dtype=jnp.float32)
        l_ref[...] = jnp.zeros(l_ref.shape, dtype=jnp.float32)
        acc_ref[...] = jnp.zeros(acc_ref.shape, dtype=jnp.float32)

    def kv_step_head(h, carry):
        q = q_ref[0, h]                              # (tq, Dh), scale folded into W_q
        kt = kt_ref[0, h]                            # (Dh, tk)
        v = v_ref[0, h]                              # (tk, Dh)

        # Plain NN matmul on the MXU, f32 accumulation.
        s = jnp.dot(q, kt, preferred_element_type=jnp.float32)               # (tq, tk)

        m_prev = m_ref[h]                            # (tq, 1)
        l_prev = l_ref[h]                            # (tq, 1)
        m_next = jnp.maximum(m_prev, jnp.max(s, axis=-1, keepdims=True))
        alpha = jnp.exp(m_prev - m_next)             # rescale factor for old stats
        p = jnp.exp(s - m_next)                      # (tq, tk), f32 (v5e has no bf16 EUP)

        l_ref[h] = alpha * l_prev + jnp.sum(p, axis=-1, keepdims=True)
        acc_ref[h] = alpha * acc_ref[h] + jnp.dot(
            p.astype(v.dtype), v, preferred_element_type=jnp.float32)
        m_ref[h] = m_next
        return carry

    if heads <= 8:
        for h in range(heads):
            kv_step_head(h, 0)
    else:
        jax.lax.fori_loop(0, heads, kv_step_head, 0)

    @pl.when(kv_idx == pl.num_programs(2) - 1)
    def _finalize():
        tq = o_ref.shape[1]
        d = o_ref.shape[2]

        def project_head(h, out_acc):
            inv = pl.reciprocal(l_ref[h], approx=True)                       # EUP, (tq, 1)
            head_out = (acc_ref[h] * inv).astype(wout_ref.dtype)             # (tq, Dh)
            return out_acc + jnp.dot(head_out, wout_ref[h],
                                     preferred_element_type=jnp.float32)     # (tq, D)

        out = jnp.zeros((tq, d), dtype=jnp.float32)
        if heads <= 8:
            for h in range(heads):
                out = project_head(h, out)
        else:
            out = jax.lax.fori_loop(0, heads, project_head, out)

        # Head merge + output projection + bias fused -> one lane-dense (tq, D) store.
        o_ref[0] = (out + bout_ref[...].astype(jnp.float32)).astype(o_ref.dtype)
        # Dropout(p=0.0) is the identity -> nothing to do.


def attention_pallas(x, w_qkv, w_out, b_out, *, heads, dim_head,
                     q_block=256, kv_block=128):
    b, n, d = x.shape
    inner = heads * dim_head
    assert w_qkv.shape == (d, 3 * inner)
    assert w_out.shape == (inner, d)
    scale = dim_head ** -0.5

    # Default tiles per review: tq=256 (K/V reuse), tk=128 so the (tq, tk) f32 score tile
    # (~128 KiB) stays well under the vreg file.
    tq = min(q_block, n)
    tk = min(kv_block, n)
    assert n % tq == 0 and n % tk == 0, "sequence length must divide the tile sizes"

    # ---- Host-side weight re-layout (done once, outside the kernels) --------------------
    # Per-head weights; softmax scale folded into W_q; K weight pre-transposed so kernel A
    # emits K as (b, H, Dh, n) without any in-kernel transpose.
    w_q_h = (w_qkv[:, :inner] * scale).reshape(d, heads, dim_head).transpose(1, 0, 2)
    w_kt_h = w_qkv[:, inner:2 * inner].reshape(d, heads, dim_head).transpose(1, 2, 0)
    w_v_h = w_qkv[:, 2 * inner:].reshape(d, heads, dim_head).transpose(1, 0, 2)
    w_out_h = w_out.reshape(heads, dim_head, d)
    b_out2d = b_out.reshape(1, d)

    # Explicit VMEM limit: fits every generation's physical VMEM and well above v5e's
    # 16 MiB default scoped limit; actual usage at these tiles is a few MiB.
    vmem_limit = 64 * 1024 * 1024

    # ---- Kernel A: per-head QKV projection (scale folded into W_q, K pre-transposed) ----
    qkv_kernel = functools.partial(_qkv_proj_kernel, heads=heads)
    q, kt, v = pl.pallas_call(
        qkv_kernel,
        out_shape=(
            jax.ShapeDtypeStruct((b, heads, n, dim_head), x.dtype),
            jax.ShapeDtypeStruct((b, heads, dim_head, n), x.dtype),
            jax.ShapeDtypeStruct((b, heads, n, dim_head), x.dtype),
        ),
        grid_spec=pltpu.PrefetchScalarGridSpec(
            num_scalar_prefetch=0,
            grid=(b, n // tq),
            in_specs=[
                pl.BlockSpec((1, tq, d), lambda bi, qi: (bi, qi, 0)),
                # constant index_maps -> weights stay VMEM-resident across grid steps
                pl.BlockSpec((heads, d, dim_head), lambda bi, qi: (0, 0, 0)),
                pl.BlockSpec((heads, dim_head, d), lambda bi, qi: (0, 0, 0)),
                pl.BlockSpec((heads, d, dim_head), lambda bi, qi: (0, 0, 0)),
            ],
            out_specs=[
                pl.BlockSpec((1, heads, tq, dim_head), lambda bi, qi: (bi, 0, qi, 0)),
                pl.BlockSpec((1, heads, dim_head, tq), lambda bi, qi: (bi, 0, 0, qi)),
                pl.BlockSpec((1, heads, tq, dim_head), lambda bi, qi: (bi, 0, qi, 0)),
            ],
        ),
        compiler_params=pltpu.CompilerParams(
            dimension_semantics=("parallel", "parallel"),
            vmem_limit_bytes=vmem_limit),
    )(x, w_q_h, w_kt_h, w_v_h)

    # ---- Kernel B: flash attention + head merge + output projection + bias --------------
    flash_kernel = functools.partial(_flash_attn_kernel, heads=heads)
    out = pl.pallas_call(
        flash_kernel,
        out_shape=jax.ShapeDtypeStruct((b, n, d), x.dtype),
        grid_spec=pltpu.PrefetchScalarGridSpec(
            num_scalar_prefetch=0,
            grid=(b, n // tq, n // tk),
            in_specs=[
                # Q block depends only on (bi, qi) -> resident across the kv axis.
                pl.BlockSpec((1, heads, tq, dim_head), lambda bi, qi, ki: (bi, 0, qi, 0)),
                # K (pre-transposed) / V streamed along the kv axis, double-buffered.
                pl.BlockSpec((1, heads, dim_head, tk), lambda bi, qi, ki: (bi, 0, 0, ki)),
                pl.BlockSpec((1, heads, tk, dim_head), lambda bi, qi, ki: (bi, 0, ki, 0)),
                # Resident output-projection weight / bias.
                pl.BlockSpec((heads, dim_head, d), lambda bi, qi, ki: (0, 0, 0)),
                pl.BlockSpec((1, d), lambda bi, qi, ki: (0, 0)),
            ],
            out_specs=pl.BlockSpec((1, tq, d), lambda bi, qi, ki: (bi, qi, 0)),
            scratch_shapes=[
                pltpu.VMEM((heads, tq, 1), jnp.float32),         # running max per head
                pltpu.VMEM((heads, tq, 1), jnp.float32),         # running sum per head
                pltpu.VMEM((heads, tq, dim_head), jnp.float32),  # un-normalized attn out
            ],
        ),
        compiler_params=pltpu.CompilerParams(
            dimension_semantics=("parallel", "parallel", "arbitrary"),
            vmem_limit_bytes=vmem_limit),
    )(q, kt, v, w_out_h, b_out2d)
    return out


def attention_reference(x, w_qkv, w_out, b_out, *, heads, dim_head):
    """Pure-JAX reference mirroring the PyTorch forward."""
    b, n, d = x.shape
    scale = dim_head ** -0.5
    qkv = x @ w_qkv
    q, k, v = jnp.split(qkv, 3, axis=-1)

    def to_heads(t):
        return t.reshape(b, n, heads, dim_head).transpose(0, 2, 1, 3)

    q, k, v = map(to_heads, (q, k, v))
    dots = jnp.einsum("bhid,bhjd->bhij", q, k) * scale
    attn = jax.nn.softmax(dots, axis=-1)
    out = jnp.einsum("bhij,bhjd->bhid", attn, v)
    out = out.transpose(0, 2, 1, 3).reshape(b, n, heads * dim_head)
    return out @ w_out + b_out


if __name__ == "__main__":
    # Small shapes consistent with the module.
    B, N, DIM = 2, 8, 32
    HEADS, DIM_HEAD = 4, 8
    INNER = HEADS * DIM_HEAD

    key = jax.random.PRNGKey(0)
    kx, kqkv, kwo, kbo = jax.random.split(key, 4)

    # f32 demo for a tight numeric check; feeding bf16 x / weights flows bf16 through the
    # MXU operand path automatically (storage dtypes follow the inputs).
    x = jax.random.normal(kx, (B, N, DIM), dtype=jnp.float32)
    # Synthetic deterministic parameters (PyTorch weights stored transposed here).
    w_qkv = jax.random.normal(kqkv, (DIM, 3 * INNER), dtype=jnp.float32) * 0.05
    w_out = jax.random.normal(kwo, (INNER, DIM), dtype=jnp.float32) * 0.05
    b_out = jax.random.normal(kbo, (DIM,), dtype=jnp.float32) * 0.05

    out = attention_pallas(x, w_qkv, w_out, b_out, heads=HEADS, dim_head=DIM_HEAD)
    jax.block_until_ready(out)

    ref = attention_reference(x, w_qkv, w_out, b_out, heads=HEADS, dim_head=DIM_HEAD)
    # Tolerance accounts for the approximate (EUP) reciprocal in the softmax normalization.
    assert jnp.allclose(out, ref, atol=2e-3, rtol=2e-3), "mismatch vs reference"

    print("KERNEL_OK")
</pallas_src>

<mosaic_0001>
module attributes {stable_mosaic.version = 11 : i64} {
  func.func @_qkv_proj_kernel(%arg0: i32, %arg1: i32, %arg2: memref<1x8x32xf32, #tpu.memory_space<vmem>>, %arg3: memref<4x32x8xf32, #tpu.memory_space<vmem>>, %arg4: memref<4x8x32xf32, #tpu.memory_space<vmem>>, %arg5: memref<4x32x8xf32, #tpu.memory_space<vmem>>, %arg6: memref<1x4x8x8xf32, #tpu.memory_space<vmem>>, %arg7: memref<1x4x8x8xf32, #tpu.memory_space<vmem>>, %arg8: memref<1x4x8x8xf32, #tpu.memory_space<vmem>>) attributes {dimension_semantics = [#tpu.dimension_semantics<parallel>, #tpu.dimension_semantics<parallel>], iteration_bounds = array<i64: 2, 1>, scalar_prefetch = 0 : i64, scratch_operands = 0 : i64, tpu.core_type = #tpu.core_type<tc>, window_params = [{transform_indices = @transform_0, window_bounds = array<i64: 1, 8, 32>}, {pipeline_mode = #tpu.pipeline_mode<synchronous>, transform_indices = @transform_1, window_bounds = array<i64: 4, 32, 8>}, {pipeline_mode = #tpu.pipeline_mode<synchronous>, transform_indices = @transform_2, window_bounds = array<i64: 4, 8, 32>}, {pipeline_mode = #tpu.pipeline_mode<synchronous>, transform_indices = @transform_3, window_bounds = array<i64: 4, 32, 8>}, {transform_indices = @transform_4, window_bounds = array<i64: 1, 4, 8, 8>}, {transform_indices = @transform_5, window_bounds = array<i64: 1, 4, 8, 8>}, {transform_indices = @transform_6, window_bounds = array<i64: 1, 4, 8, 8>}]} {
    %c0 = arith.constant 0 : index
    %c0_0 = arith.constant 0 : index
    %c0_1 = arith.constant 0 : index
    %0 = vector.load %arg2[%c0, %c0_0, %c0_1] : memref<1x8x32xf32, #tpu.memory_space<vmem>>, vector<1x8x32xf32>
    %1 = vector.shape_cast %0 : vector<1x8x32xf32> to vector<8x32xf32>
    %c0_2 = arith.constant 0 : index
    %c0_3 = arith.constant 0 : index
    %c0_4 = arith.constant 0 : index
    %2 = vector.load %arg3[%c0_2, %c0_3, %c0_4] : memref<4x32x8xf32, #tpu.memory_space<vmem>>, vector<1x32x8xf32>
    %3 = vector.shape_cast %2 : vector<1x32x8xf32> to vector<32x8xf32>
    %cst = arith.constant dense<0.000000e+00> : vector<8x8xf32>
    %4 = tpu.matmul %1, %3, %cst {dimension_numbers = #tpu.dot_dimension_numbers<[1], [0], [0], [1], [0, 0, 1, 1], [], []>} : vector<8x32xf32>, vector<32x8xf32>, vector<8x8xf32> -> vector<8x8xf32>
    %c0_5 = arith.constant 0 : index
    %c0_6 = arith.constant 0 : index
    %c0_7 = arith.constant 0 : index
    %5 = vector.load %arg4[%c0_5, %c0_6, %c0_7] : memref<4x8x32xf32, #tpu.memory_space<vmem>>, vector<1x8x32xf32>
    %6 = vector.shape_cast %5 : vector<1x8x32xf32> to vector<8x32xf32>
    %cst_8 = arith.constant dense<0.000000e+00> : vector<8x8xf32>
    %7 = tpu.matmul %6, %1, %cst_8 {dimension_numbers = #tpu.dot_dimension_numbers<[1], [1], [0], [0], [0, 0, 1, 0], [], []>} : vector<8x32xf32>, vector<8x32xf32>, vector<8x8xf32> -> vector<8x8xf32>
    %c0_9 = arith.constant 0 : index
    %c0_10 = arith.constant 0 : index
    %c0_11 = arith.constant 0 : index
    %8 = vector.load %arg5[%c0_9, %c0_10, %c0_11] : memref<4x32x8xf32, #tpu.memory_space<vmem>>, vector<1x32x8xf32>
    %9 = vector.shape_cast %8 : vector<1x32x8xf32> to vector<32x8xf32>
    %cst_12 = arith.constant dense<0.000000e+00> : vector<8x8xf32>
    %10 = tpu.matmul %1, %9, %cst_12 {dimension_numbers = #tpu.dot_dimension_numbers<[1], [0], [0], [1], [0, 0, 1, 1], [], []>} : vector<8x32xf32>, vector<32x8xf32>, vector<8x8xf32> -> vector<8x8xf32>
    %c0_13 = arith.constant 0 : index
    %c0_14 = arith.constant 0 : index
    %c0_15 = arith.constant 0 : index
    %c0_16 = arith.constant 0 : index
    %11 = vector.load %arg6[%c0_13, %c0_14, %c0_15, %c0_16] : memref<1x4x8x8xf32, #tpu.memory_space<vmem>>, vector<1x1x8x8xf32>
    %12 = vector.shape_cast %11 : vector<1x1x8x8xf32> to vector<8x8xf32>
    %13 = vector.shape_cast %4 : vector<8x8xf32> to vector<1x1x8x8xf32>
    tpu.vector_store %arg6[%c0_13, %c0_14, %c0_15, %c0_16], %13 {strides = array<i32>} : memref<1x4x8x8xf32, #tpu.memory_space<vmem>>, vector<1x1x8x8xf32>,
    %c0_17 = arith.constant 0 : index
    %c0_18 = arith.constant 0 : index
    %c0_19 = arith.constant 0 : index
    %c0_20 = arith.constant 0 : index
    %14 = vector.load %arg7[%c0_17, %c0_18, %c0_19, %c0_20] : memref<1x4x8x8xf32, #tpu.memory_space<vmem>>, vector<1x1x8x8xf32>
    %15 = vector.shape_cast %14 : vector<1x1x8x8xf32> to vector<8x8xf32>
    %16 = vector.shape_cast %7 : vector<8x8xf32> to vector<1x1x8x8xf32>
    tpu.vector_store %arg7[%c0_17, %c0_18, %c0_19, %c0_20], %16 {strides = array<i32>} : memref<1x4x8x8xf32, #tpu.memory_space<vmem>>, vector<1x1x8x8xf32>,
    %c0_21 = arith.constant 0 : index
    %c0_22 = arith.constant 0 : index
    %c0_23 = arith.constant 0 : index
    %c0_24 = arith.constant 0 : index
    %17 = vector.load %arg8[%c0_21, %c0_22, %c0_23, %c0_24] : memref<1x4x8x8xf32, #tpu.memory_space<vmem>>, vector<1x1x8x8xf32>
    %18 = vector.shape_cast %17 : vector<1x1x8x8xf32> to vector<8x8xf32>
    %19 = vector.shape_cast %10 : vector<8x8xf32> to vector<1x1x8x8xf32>
    tpu.vector_store %arg8[%c0_21, %c0_22, %c0_23, %c0_24], %19 {strides = array<i32>} : memref<1x4x8x8xf32, #tpu.memory_space<vmem>>, vector<1x1x8x8xf32>,
    %c1 = arith.constant 1 : index
    %c0_25 = arith.constant 0 : index
    %c0_26 = arith.constant 0 : index
    %20 = vector.load %arg3[%c1, %c0_25, %c0_26] : memref<4x32x8xf32, #tpu.memory_space<vmem>>, vector<1x32x8xf32>
    %21 = vector.shape_cast %20 : vector<1x32x8xf32> to vector<32x8xf32>
    %cst_27 = arith.constant dense<0.000000e+00> : vector<8x8xf32>
    %22 = tpu.matmul %1, %21, %cst_27 {dimension_numbers = #tpu.dot_dimension_numbers<[1], [0], [0], [1], [0, 0, 1, 1], [], []>} : vector<8x32xf32>, vector<32x8xf32>, vector<8x8xf32> -> vector<8x8xf32>
    %c1_28 = arith.constant 1 : index
    %c0_29 = arith.constant 0 : index
    %c0_30 = arith.constant 0 : index
    %23 = vector.load %arg4[%c1_28, %c0_29, %c0_30] : memref<4x8x32xf32, #tpu.memory_space<vmem>>, vector<1x8x32xf32>
    %24 = vector.shape_cast %23 : vector<1x8x32xf32> to vector<8x32xf32>
    %cst_31 = arith.constant dense<0.000000e+00> : vector<8x8xf32>
    %25 = tpu.matmul %24, %1, %cst_31 {dimension_numbers = #tpu.dot_dimension_numbers<[1], [1], [0], [0], [0, 0, 1, 0], [], []>} : vector<8x32xf32>, vector<8x32xf32>, vector<8x8xf32> -> vector<8x8xf32>
    %c1_32 = arith.constant 1 : index
    %c0_33 = arith.constant 0 : index
    %c0_34 = arith.constant 0 : index
    %26 = vector.load %arg5[%c1_32, %c0_33, %c0_34] : memref<4x32x8xf32, #tpu.memory_space<vmem>>, vector<1x32x8xf32>
    %27 = vector.shape_cast %26 : vector<1x32x8xf32> to vector<32x8xf32>
    %cst_35 = arith.constant dense<0.000000e+00> : vector<8x8xf32>
    %28 = tpu.matmul %1, %27, %cst_35 {dimension_numbers = #tpu.dot_dimension_numbers<[1], [0], [0], [1], [0, 0, 1, 1], [], []>} : vector<8x32xf32>, vector<32x8xf32>, vector<8x8xf32> -> vector<8x8xf32>
    %c0_36 = arith.constant 0 : index
    %c1_37 = arith.constant 1 : index
    %c0_38 = arith.constant 0 : index
    %c0_39 = arith.constant 0 : index
    %29 = vector.load %arg6[%c0_36, %c1_37, %c0_38, %c0_39] : memref<1x4x8x8xf32, #tpu.memory_space<vmem>>, vector<1x1x8x8xf32>
    %30 = vector.shape_cast %29 : vector<1x1x8x8xf32> to vector<8x8xf32>
    %31 = vector.shape_cast %22 : vector<8x8xf32> to vector<1x1x8x8xf32>
    tpu.vector_store %arg6[%c0_36, %c1_37, %c0_38, %c0_39], %31 {strides = array<i32>} : memref<1x4x8x8xf32, #tpu.memory_space<vmem>>, vector<1x1x8x8xf32>,
    %c0_40 = arith.constant 0 : index
    %c1_41 = arith.constant 1 : index
    %c0_42 = arith.constant 0 : index
    %c0_43 = arith.constant 0 : index
    %32 = vector.load %arg7[%c0_40, %c1_41, %c0_42, %c0_43] : memref<1x4x8x8xf32, #tpu.memory_space<vmem>>, vector<1x1x8x8xf32>
    %33 = vector.shape_cast %32 : vector<1x1x8x8xf32> to vector<8x8xf32>
    %34 = vector.shape_cast %25 : vector<8x8xf32> to vector<1x1x8x8xf32>
    tpu.vector_store %arg7[%c0_40, %c1_41, %c0_42, %c0_43], %34 {strides = array<i32>} : memref<1x4x8x8xf32, #tpu.memory_space<vmem>>, vector<1x1x8x8xf32>,
    %c0_44 = arith.constant 0 : index
    %c1_45 = arith.constant 1 : index
    %c0_46 = arith.constant 0 : index
    %c0_47 = arith.constant 0 : index
    %35 = vector.load %arg8[%c0_44, %c1_45, %c0_46, %c0_47] : memref<1x4x8x8xf32, #tpu.memory_space<vmem>>, vector<1x1x8x8xf32>
    %36 = vector.shape_cast %35 : vector<1x1x8x8xf32> to vector<8x8xf32>
    %37 = vector.shape_cast %28 : vector<8x8xf32> to vector<1x1x8x8xf32>
    tpu.vector_store %arg8[%c0_44, %c1_45, %c0_46, %c0_47], %37 {strides = array<i32>} : memref<1x4x8x8xf32, #tpu.memory_space<vmem>>, vector<1x1x8x8xf32>,
    %c2 = arith.constant 2 : index
    %c0_48 = arith.constant 0 : index
    %c0_49 = arith.constant 0 : index
    %38 = vector.load %arg3[%c2, %c0_48, %c0_49] : memref<4x32x8xf32, #tpu.memory_space<vmem>>, vector<1x32x8xf32>
    %39 = vector.shape_cast %38 : vector<1x32x8xf32> to vector<32x8xf32>
    %cst_50 = arith.constant dense<0.000000e+00> : vector<8x8xf32>
    %40 = tpu.matmul %1, %39, %cst_50 {dimension_numbers = #tpu.dot_dimension_numbers<[1], [0], [0], [1], [0, 0, 1, 1], [], []>} : vector<8x32xf32>, vector<32x8xf32>, vector<8x8xf32> -> vector<8x8xf32>
    %c2_51 = arith.constant 2 : index
    %c0_52 = arith.constant 0 : index
    %c0_53 = arith.constant 0 : index
    %41 = vector.load %arg4[%c2_51, %c0_52, %c0_53] : memref<4x8x32xf32, #tpu.memory_space<vmem>>, vector<1x8x32xf32>
    %42 = vector.shape_cast %41 : vector<1x8x32xf32> to vector<8x32xf32>
    %cst_54 = arith.constant dense<0.000000e+00> : vector<8x8xf32>
    %43 = tpu.matmul %42, %1, %cst_54 {dimension_numbers = #tpu.dot_dimension_numbers<[1], [1], [0], [0], [0, 0, 1, 0], [], []>} : vector<8x32xf32>, vector<8x32xf32>, vector<8x8xf32> -> vector<8x8xf32>
    %c2_55 = arith.constant 2 : index
    %c0_56 = arith.constant 0 : index
    %c0_57 = arith.constant 0 : index
    %44 = vector.load %arg5[%c2_55, %c0_56, %c0_57] : memref<4x32x8xf32, #tpu.memory_space<vmem>>, vector<1x32x8xf32>
    %45 = vector.shape_cast %44 : vector<1x32x8xf32> to vector<32x8xf32>
    %cst_58 = arith.constant dense<0.000000e+00> : vector<8x8xf32>
    %46 = tpu.matmul %1, %45, %cst_58 {dimension_numbers = #tpu.dot_dimension_numbers<[1], [0], [0], [1], [0, 0, 1, 1], [], []>} : vector<8x32xf32>, vector<32x8xf32>, vector<8x8xf32> -> vector<8x8xf32>
    %c0_59 = arith.constant 0 : index
    %c2_60 = arith.constant 2 : index
    %c0_61 = arith.constant 0 : index
    %c0_62 = arith.constant 0 : index
    %47 = vector.load %arg6[%c0_59, %c2_60, %c0_61, %c0_62] : memref<1x4x8x8xf32, #tpu.memory_space<vmem>>, vector<1x1x8x8xf32>
    %48 = vector.shape_cast %47 : vector<1x1x8x8xf32> to vector<8x8xf32>
    %49 = vector.shape_cast %40 : vector<8x8xf32> to vector<1x1x8x8xf32>
    tpu.vector_store %arg6[%c0_59, %c2_60, %c0_61, %c0_62], %49 {strides = array<i32>} : memref<1x4x8x8xf32, #tpu.memory_space<vmem>>, vector<1x1x8x8xf32>,
    %c0_63 = arith.constant 0 : index
    %c2_64 = arith.constant 2 : index
    %c0_65 = arith.constant 0 : index
    %c0_66 = arith.constant 0 : index
    %50 = vector.load %arg7[%c0_63, %c2_64, %c0_65, %c0_66] : memref<1x4x8x8xf32, #tpu.memory_space<vmem>>, vector<1x1x8x8xf32>
    %51 = vector.shape_cast %50 : vector<1x1x8x8xf32> to vector<8x8xf32>
    %52 = vector.shape_cast %43 : vector<8x8xf32> to vector<1x1x8x8xf32>
    tpu.vector_store %arg7[%c0_63, %c2_64, %c0_65, %c0_66], %52 {strides = array<i32>} : memref<1x4x8x8xf32, #tpu.memory_space<vmem>>, vector<1x1x8x8xf32>,
    %c0_67 = arith.constant 0 : index
    %c2_68 = arith.constant 2 : index
    %c0_69 = arith.constant 0 : index
    %c0_70 = arith.constant 0 : index
    %53 = vector.load %arg8[%c0_67, %c2_68, %c0_69, %c0_70] : memref<1x4x8x8xf32, #tpu.memory_space<vmem>>, vector<1x1x8x8xf32>
    %54 = vector.shape_cast %53 : vector<1x1x8x8xf32> to vector<8x8xf32>
    %55 = vector.shape_cast %46 : vector<8x8xf32> to vector<1x1x8x8xf32>
    tpu.vector_store %arg8[%c0_67, %c2_68, %c0_69, %c0_70], %55 {strides = array<i32>} : memref<1x4x8x8xf32, #tpu.memory_space<vmem>>, vector<1x1x8x8xf32>,
    %c3 = arith.constant 3 : index
    %c0_71 = arith.constant 0 : index
    %c0_72 = arith.constant 0 : index
    %56 = vector.load %arg3[%c3, %c0_71, %c0_72] : memref<4x32x8xf32, #tpu.memory_space<vmem>>, vector<1x32x8xf32>
    %57 = vector.shape_cast %56 : vector<1x32x8xf32> to vector<32x8xf32>
    %cst_73 = arith.constant dense<0.000000e+00> : vector<8x8xf32>
    %58 = tpu.matmul %1, %57, %cst_73 {dimension_numbers = #tpu.dot_dimension_numbers<[1], [0], [0], [1], [0, 0, 1, 1], [], []>} : vector<8x32xf32>, vector<32x8xf32>, vector<8x8xf32> -> vector<8x8xf32>
    %c3_74 = arith.constant 3 : index
    %c0_75 = arith.constant 0 : index
    %c0_76 = arith.constant 0 : index
    %59 = vector.load %arg4[%c3_74, %c0_75, %c0_76] : memref<4x8x32xf32, #tpu.memory_space<vmem>>, vector<1x8x32xf32>
    %60 = vector.shape_cast %59 : vector<1x8x32xf32> to vector<8x32xf32>
    %cst_77 = arith.constant dense<0.000000e+00> : vector<8x8xf32>
    %61 = tpu.matmul %60, %1, %cst_77 {dimension_numbers = #tpu.dot_dimension_numbers<[1], [1], [0], [0], [0, 0, 1, 0], [], []>} : vector<8x32xf32>, vector<8x32xf32>, vector<8x8xf32> -> vector<8x8xf32>
    %c3_78 = arith.constant 3 : index
    %c0_79 = arith.constant 0 : index
    %c0_80 = arith.constant 0 : index
    %62 = vector.load %arg5[%c3_78, %c0_79, %c0_80] : memref<4x32x8xf32, #tpu.memory_space<vmem>>, vector<1x32x8xf32>
    %63 = vector.shape_cast %62 : vector<1x32x8xf32> to vector<32x8xf32>
    %cst_81 = arith.constant dense<0.000000e+00> : vector<8x8xf32>
    %64 = tpu.matmul %1, %63, %cst_81 {dimension_numbers = #tpu.dot_dimension_numbers<[1], [0], [0], [1], [0, 0, 1, 1], [], []>} : vector<8x32xf32>, vector<32x8xf32>, vector<8x8xf32> -> vector<8x8xf32>
    %c0_82 = arith.constant 0 : index
    %c3_83 = arith.constant 3 : index
    %c0_84 = arith.constant 0 : index
    %c0_85 = arith.constant 0 : index
    %65 = vector.load %arg6[%c0_82, %c3_83, %c0_84, %c0_85] : memref<1x4x8x8xf32, #tpu.memory_space<vmem>>, vector<1x1x8x8xf32>
    %66 = vector.shape_cast %65 : vector<1x1x8x8xf32> to vector<8x8xf32>
    %67 = vector.shape_cast %58 : vector<8x8xf32> to vector<1x1x8x8xf32>
    tpu.vector_store %arg6[%c0_82, %c3_83, %c0_84, %c0_85], %67 {strides = array<i32>} : memref<1x4x8x8xf32, #tpu.memory_space<vmem>>, vector<1x1x8x8xf32>,
    %c0_86 = arith.constant 0 : index
    %c3_87 = arith.constant 3 : index
    %c0_88 = arith.constant 0 : index
    %c0_89 = arith.constant 0 : index
    %68 = vector.load %arg7[%c0_86, %c3_87, %c0_88, %c0_89] : memref<1x4x8x8xf32, #tpu.memory_space<vmem>>, vector<1x1x8x8xf32>
    %69 = vector.shape_cast %68 : vector<1x1x8x8xf32> to vector<8x8xf32>
    %70 = vector.shape_cast %61 : vector<8x8xf32> to vector<1x1x8x8xf32>
    tpu.vector_store %arg7[%c0_86, %c3_87, %c0_88, %c0_89], %70 {strides = array<i32>} : memref<1x4x8x8xf32, #tpu.memory_space<vmem>>, vector<1x1x8x8xf32>,
    %c0_90 = arith.constant 0 : index
    %c3_91 = arith.constant 3 : index
    %c0_92 = arith.constant 0 : index
    %c0_93 = arith.constant 0 : index
    %71 = vector.load %arg8[%c0_90, %c3_91, %c0_92, %c0_93] : memref<1x4x8x8xf32, #tpu.memory_space<vmem>>, vector<1x1x8x8xf32>
    %72 = vector.shape_cast %71 : vector<1x1x8x8xf32> to vector<8x8xf32>
    %73 = vector.shape_cast %64 : vector<8x8xf32> to vector<1x1x8x8xf32>
    tpu.vector_store %arg8[%c0_90, %c3_91, %c0_92, %c0_93], %73 {strides = array<i32>} : memref<1x4x8x8xf32, #tpu.memory_space<vmem>>, vector<1x1x8x8xf32>,
    return
  }
  func.func @transform_0(%arg0: i32, %arg1: i32) -> (i32, i32, i32) {
    %c0_i32 = arith.constant 0 : i32
    %c0_i32_0 = arith.constant 0 : i32
    return %arg0, %arg1, %c0_i32 : i32, i32, i32
  }
  func.func @transform_1(%arg0: i32, %arg1: i32) -> (i32, i32, i32) {
    %c0_i32 = arith.constant 0 : i32
    %c0_i32_0 = arith.constant 0 : i32
    %c0_i32_1 = arith.constant 0 : i32
    %c0_i32_2 = arith.constant 0 : i32
    return %c0_i32, %c0_i32_0, %c0_i32_1 : i32, i32, i32
  }
  func.func @transform_2(%arg0: i32, %arg1: i32) -> (i32, i32, i32) {
    %c0_i32 = arith.constant 0 : i32
    %c0_i32_0 = arith.constant 0 : i32
    %c0_i32_1 = arith.constant 0 : i32
    %c0_i32_2 = arith.constant 0 : i32
    return %c0_i32, %c0_i32_0, %c0_i32_1 : i32, i32, i32
  }
  func.func @transform_3(%arg0: i32, %arg1: i32) -> (i32, i32, i32) {
    %c0_i32 = arith.constant 0 : i32
    %c0_i32_0 = arith.constant 0 : i32
    %c0_i32_1 = arith.constant 0 : i32
    %c0_i32_2 = arith.constant 0 : i32
    return %c0_i32, %c0_i32_0, %c0_i32_1 : i32, i32, i32
  }
  func.func @transform_4(%arg0: i32, %arg1: i32) -> (i32, i32, i32, i32) {
    %c0_i32 = arith.constant 0 : i32
    %c0_i32_0 = arith.constant 0 : i32
    %c0_i32_1 = arith.constant 0 : i32
    return %arg0, %c0_i32, %arg1, %c0_i32_0 : i32, i32, i32, i32
  }
  func.func @transform_5(%arg0: i32, %arg1: i32) -> (i32, i32, i32, i32) {
    %c0_i32 = arith.constant 0 : i32
    %c0_i32_0 = arith.constant 0 : i32
    %c0_i32_1 = arith.constant 0 : i32
    return %arg0, %c0_i32, %c0_i32_0, %arg1 : i32, i32, i32, i32
  }
  func.func @transform_6(%arg0: i32, %arg1: i32) -> (i32, i32, i32, i32) {
    %c0_i32 = arith.constant 0 : i32
    %c0_i32_0 = arith.constant 0 : i32
    %c0_i32_1 = arith.constant 0 : i32
    return %arg0, %c0_i32, %arg1, %c0_i32_0 : i32, i32, i32, i32
  }
}

</mosaic_0001>

<bundles_post_ra>
// kernel: tpu_custom_call.1
= control target key start
LH: loop header
LB: loop body
LE: loop exit
PB: predicated region body
PF: predicated region fallthrough
CT: control target
= control target key end

     0   :  { %s1483_s0 = inlined_call_operand.vmem [shape: f32[2,8,32], index: 0, kind: input, shape index: {}]   ;;  %s1484_s1 = inlined_call_operand.vmem [shape: f32[4,32,8], index: 1, kind: input, shape index: {}]   ;;  %s1485_s2 = inlined_call_operand.vmem [shape: f32[4,8,32], index: 2, kind: input, shape index: {}]   ;;  %s1486_s3 = inlined_call_operand.vmem [shape: f32[4,32,8], index: 3, kind: input, shape index: {}]   ;;  %s1487_s4 = inlined_call_operand.hbm [shape: f32[2,4,8,8], index: 4, kind: output, shape index: {0}]   ;;  %s1488_s5 = inlined_call_operand.hbm [shape: f32[2,4,8,8], index: 5, kind: output, shape index: {1}]   ;;  %s1489_s6 = inlined_call_operand.hbm [shape: f32[2,4,8,8], index: 6, kind: output, shape index: {2}]  }
   0x1   :  { %1492 = sst [smem:[#allocation9_spill]] %s1483_s0 }
   0x2   :  { %1493 = sst [smem:[#allocation10_spill]] %s1484_s1 }
   0x3   :  { %1494 = sst [smem:[#allocation11_spill]] %s1485_s2 }
   0x4   :  { %1495 = sst [smem:[#allocation12_spill]] %s1486_s3 }
   0x5   :  { %12 = vsyncpa [#allocation3], 0 }
   0x6   :  { %14 = vsyncpa [#allocation3 + $0x1], 0 }
   0x7   :  { %15 = vsyncpa [#allocation5], 0 }
   0x8   :  { %17 = vsyncpa [#allocation5 + $0x1], 0  ;;  %s1142_s21 = smov 0   ;;  %s1144_s22 = smov 0  }
   0x9   :  { %s1146_s23 = smov 0   ;;  %s1148_s24 = smov 0  }
   0xa   :  { %s1150_s25 = smov 0   ;;  %s1152_s26 = smov 0  }
   0xb LB: > { %s823_s27 = sadd.s32 4294967295, %s1103_s26   ;;  %s1490_s28 = sadd.s32 4294967294, %s1103_s26   ;;  %s1103_s26 = sphi %s1152_s26, %s23_s26   ;;  %s1099_s25 = sphi %s1150_s25, %s1508_s25   ;;  %s1095_s24 = sphi %s1148_s24, %s1507_s24   ;;  %s1091_s23 = sphi %s1146_s23, %s1506_s23   ;;  %s1087_s22 = sphi %s1144_s22, %s1505_s22   ;;  %s1083_s21 = sphi %s1142_s21, %s1504_s21  }
   0xc   : > { %s35_s29 = sadd.s32 1, %s1099_s25  ;;  %s135_s30 = sadd.s32 1, %s1091_s23 }
   0xd   : > { %p37_p0 = scmp.ge.s32.totalorder %s35_s29, 2  ;;  %p145_p1 = scmp.ne.s32.totalorder %s1091_s23, %s1087_s22 }
   0xe   : > { %p146_p2 = scmp.eq.s32.totalorder %s823_s27, 1  ;;  %p151_p3 = scmp.ne.s32.totalorder %s1087_s22, %s1083_s21 }
   0xf   : > { %s1510_s29 = smov (%p37_p0, %s35_s29), 0  ;;  %p152_p5 = scmp.eq.s32.totalorder %s1490_s28, 1 }
  0x10   : > { %p1184_p4 = por %p146_p2, %p145_p1  ;;  %s130_s8 = ssub.s32 %s1099_s25, %s1510_s29 }
  0x11   : > { %p827_p6 = scmp.ge.s32.totalorder %s1103_s26, 1  ;;  %p133_p7 = scmp.eq.s32.totalorder %s130_s8, 0 }
  0x12   : > { %p1193_p8 = por %p152_p5, %p151_p3  ;;  %p245_p9 = scmp.lt.s32.totalorder %s1103_s26, 3 }
  0x13   : > { %s1199_s10 = scalar_select %p133_p7, %s1091_s23, %s135_s30  }
  0x14   : > { %p246_p10 = pnand %p827_p6, %p245_p9 }
  0x15   : > { %s1498_s3 = sld [smem:[#allocation12_spill]] (!%p246_p10)  ;;  %p287_p11 = scmp.lt.s32.totalorder (!%p246_p10), %s1095_s24, 1 }
  0x16   : > { %249 = sbr.rel (%p246_p10) target bundleno = 213 (0xd5), region = 36  ;;  %s1499_s1 = sld [smem:[#allocation10_spill]] (!%p246_p10) }
  0x17   : > { %s1500_s0 = sld [smem:[#allocation9_spill]] (!%p246_p10)  ;;  %s1491_s16 = sand.u32 (!%p246_p10), 1, %s1087_s22  }
  0x18   : > { %s1501_s2 = sld [smem:[#allocation11_spill]] (!%p246_p10)  ;;  %s828_s17 = sshll.u32 (!%p246_p10), %s1491_s16, 5 }
  0x19   : > { %s1351_s19 = scalar_lea.vmem (!%p246_p10), [#allocation6], %s828_s17  ;;  %s279_s20 = scalar_lea.vmem (!%p246_p10), [#allocation4], %s828_s17 }
  0x1a   : > { %s895_s30 = sshll.u32 (!%p246_p10), %s1095_s24, 5  ;;  %s678_s8 = sshll.u32 (!%p246_p10), %s1351_s19, 4  ;;  %s1397_s8 = int_to_ptr.vmem [resolvable:$true] %s678_s8 }
  0x1b   : > { %v350_v0 = vld [vmem:[%s1498_s3 + $0x18] sm:$0xff]  ;;  %v349_v2 = vld [vmem:[%s1498_s3 + $0x10] sm:$0xff]  ;;  %v348_v4 = vld [vmem:[%s1498_s3 + $0x8] sm:$0xff]  ;;  %s288_s13 = scalar_select %p287_p11, %s1095_s24, 1  ;;  %vm299_vm0 = vcmask 261120   ;;  %vm371_vm1 = vcmask 64512  }
  0x1c   : > { %v839_v1 = vld [vmem:[%s1499_s1 + $0x38] sm:$0xff]  ;;  %363 = vmatpush.msra.mxu2 %v350_v0  ;;  %v838_v3 = vld [vmem:[%s1499_s1 + $0x30] sm:$0xff]  ;;  %v837_v5 = vld [vmem:[%s1499_s1 + $0x28] sm:$0xff]  ;;  %s1371_s15 = sand.u32 1, %s823_s27   ;;  %s641_s24 = scalar_lea.hbm %s1487_s4, %s895_s30 }
  0x1d   : > { %392 = vmatpush.msra.mxu3 %v839_v1  ;;  %v298_v6 = vld [vmem:[%s1499_s1 + $0x18] sm:$0xff]  ;;  %v297_v7 = vld [vmem:[%s1499_s1 + $0x10] sm:$0xff]  ;;  %v347_v8 = vld [vmem:[%s1498_s3] sm:$0xff]  ;;  %s831_s18 = sshll.u32 %s288_s13, 3  ;;  %s659_s13 = scalar_lea.hbm %s1488_s5, %s895_s30 }
  0x1e   : > { %364 = vmatpush.msra.mxu2 %v349_v2  ;;  %315 = vmatpush.msra.mxu0 %v298_v6  ;;  %v836_v9 = vld [vmem:[%s1499_s1 + $0x20] sm:$0xff]  ;;  %s293_s11 = scalar_lea.vmem %s1500_s0, %s831_s18  ;;  %v855_v11 = vld [vmem:[%s1499_s1 + $0x58] sm:$0xff]  ;;  %v296_v12 = vld [vmem:[%s1499_s1 + $0x8] sm:$0xff]  ;;  %s1347_s18 = scalar_lea.vmem [#allocation2], %s828_s17 }
  0x1f   : > { %393 = vmatpush.msra.mxu3 %v838_v3  ;;  %v1236_v10 = vld [vmem:[%s293_s11] sm:$0xff]  ;;  %v854_v13 = vld [vmem:[%s1499_s1 + $0x50] sm:$0xff]  ;;  %v879_v15 = vld [vmem:[%s1498_s3 + $0x78] sm:$0xff]  ;;  %s660_s11 = sshll.u32 %s279_s20, 4  ;;  %s642_s16 = sshll.u32 %s1347_s18, 4  ;;  %s1380_s11 = int_to_ptr.vmem [resolvable:$true] %s660_s11  ;;  %s1392_s16 = int_to_ptr.vmem [resolvable:$true] %s642_s16 }
  0x20   : > { %365 = vmatpush.msra.mxu2 %v348_v4  ;;  %316 = vmatpush.msra.mxu0 %v297_v7  ;;  %v295_v14 = vld [vmem:[%s1499_s1] sm:$0xff]  ;;  %v853_v16 = vld [vmem:[%s1499_s1 + $0x48] sm:$0xff]  ;;  %v847_v18 = vld [vmem:[%s1498_s3 + $0x38] sm:$0xff]  ;;  %s1384_s27 = sshll.u32 %s641_s24, 4  ;;  %s624_s0 = scalar_lea.sflag [#allocation5], %s1371_s15  ;;  %s645_s27 = int_to_ptr.hbm [resolvable:$true] %s1384_s27 }
  0x21   : > { %394 = vmatpush.msra.mxu3 %v837_v5  ;;  %833 = vmatpush.xpose.msk.msra.mxu1 %vm299_vm0, %v1236_v10  ;;  %v323_v17 = vld [vmem:[%s1501_s2] sm:$0xff]  ;;  %v878_v20 = vld [vmem:[%s1498_s3 + $0x70] sm:$0xff]  ;;  %v845_v23 = vld [vmem:[%s1498_s3 + $0x28] sm:$0xff] }
  0x22   : > { %366 = vmatpush.msra.mxu2 %v347_v8  ;;  %317 = vmatpush.msra.mxu0 %v296_v12  ;;  %v852_v19 = vld [vmem:[%s1499_s1 + $0x40] sm:$0xff]  ;;  %v846_v21 = vld [vmem:[%s1498_s3 + $0x30] sm:$0xff]  ;;  %v877_v24 = vld [vmem:[%s1498_s3 + $0x68] sm:$0xff] }
  0x23   : > { %395 = vmatpush.msra.mxu3 %v836_v9  ;;  %835 = vmatmul.msk.f32.vlgmr.msra.gmra.mxu2 %vm299_vm0, %v1236_v10  ;;  %v857_v22 = vld [vmem:[%s1501_s2 + $0x10] sm:$0xff]  ;;  %v863_v25 = vld [vmem:[%s1498_s3 + $0x58] sm:$0xff]  ;;  %v844_v26 = vld [vmem:[%s1498_s3 + $0x20] sm:$0xff] }
  0x24   : > { %840 = vmatmul.msk.f32.vlgmr.msra.gmra.mxu3 %vm299_vm0, %v1236_v10  ;;  %473 = vmatpush.msrb.mxu2 %v855_v11  ;;  %v876_v27 = vld [vmem:[%s1498_s3 + $0x60] sm:$0xff]  ;;  %v862_v28 = vld [vmem:[%s1498_s3 + $0x50] sm:$0xff]  ;;  %v841_v29 = vld [vmem:[%s1501_s2 + $0x8] sm:$0xff] }
  0x25   : > { %858 = vmatpush.xpose.msk.msrb.mxu3 %vm299_vm0, %v1236_v10  ;;  %842 = vmatpush.xpose.msk.msrb.mxu1 %vm299_vm0, %v1236_v10  ;;  %v871_v30 = vld [vmem:[%s1499_s1 + $0x78] sm:$0xff]  ;;  %v861_v31 = vld [vmem:[%s1498_s3 + $0x48] sm:$0xff]  ;;  %v870_v33 = vld [vmem:[%s1499_s1 + $0x70] sm:$0xff] }
  0x26   : > { %474 = vmatpush.msrb.mxu2 %v854_v13  ;;  %318 = vmatpush.msra.mxu0 %v295_v14  ;;  %v873_v32 = vld [vmem:[%s1501_s2 + $0x18] sm:$0xff]  ;;  %v860_v34 = vld [vmem:[%s1498_s3 + $0x40] sm:$0xff]  ;;  %v869_v35 = vld [vmem:[%s1499_s1 + $0x68] sm:$0xff]  ;;  %s677_s2 = scalar_lea.hbm %s1489_s6, %s895_s30  ;;  %s1382_s3 = sshll.u32 %s659_s13, 4  ;;  %s663_s3 = int_to_ptr.hbm [resolvable:$true] %s1382_s3 }
  0x27   : > { %832 = vmatmul.msk.f32.vlgmr.msra.gmra.mxu0 %vm299_vm0, %v1236_v10  ;;  %834 = vmatmul.msk.f32.vlgmr.msra.gmra.mxu1 %vm299_vm0, %v323_v17  ;;  %v868_v36 = vld [vmem:[%s1499_s1 + $0x60] sm:$0xff]  ;;  %s1388_s28 = sshll.u32 %s677_s2, 4  ;;  %s979_s1 = sshra.s32 %s663_s3, 4  ;;  %s681_s28 = int_to_ptr.hbm [resolvable:$true] %s1388_s28  ;;  %s980_s1 = int_to_ptr.hbm [resolvable:$true] %s979_s1 }
  0x28   : > { %475 = vmatpush.msrb.mxu2 %v853_v16  ;;  %442 = vmatpush.msrb.mxu0 %v847_v18  ;;  %s981_s2 = scalar_lea.hbm %s980_s1, 32  ;;  %s985_s30 = scalar_lea.hbm %s1488_s5, 64 }
  0x29   : > { %604 = vmatpush.msra.mxu3 %v879_v15  ;;  %523 = vmatpush.msra.mxu1 %v863_v25  ;;  %p982_p12 = scmp.ne.s32.totalorder %s980_s1, %s981_s2  ;;  %p986_p1 = scmp.lt.s32.totalorder %s980_s1, %s1488_s5 }
  0x2a   : > { %476 = vmatpush.msrb.mxu2 %v852_v19  ;;  %443 = vmatpush.msrb.mxu0 %v846_v21  ;;  %p987_p2 = scmp.lt.s32.totalorder %s985_s30, %s981_s2 }
  0x2b   : > { %605 = vmatpush.msra.mxu3 %v878_v20  ;;  %856 = vmatmul.msk.f32.vlgmr.msrb.gmra.mxu2 %vm299_vm0, %v1236_v10  ;;  %p983_p13 = pnand %p982_p12, %p1184_p4 }
  0x2c   : > { %874 = vmatpush.xpose.msk.msra.mxu2 %vm299_vm0, %v1236_v10  ;;  %859 = vmatmul.msk.f32.vlgmr.msrb.gmra.mxu3 %vm299_vm0, %v857_v22  ;;  %p988_p3 = por %p987_p2, %p986_p1 }
  0x2d   : > { %444 = vmatpush.msrb.mxu0 %v845_v23  ;;  %606 = vmatpush.msra.mxu3 %v877_v24  ;;  %p984_p0 = pneg %p983_p13 }
  0x2e   : > { %524 = vmatpush.msra.mxu1 %v862_v28 }
  0x2f   : > { %445 = vmatpush.msrb.mxu0 %v844_v26  ;;  %607 = vmatpush.msra.mxu3 %v876_v27  ;;  %p989_p5 = pnand %p988_p3, %p984_p0 }
  0x30   : > { %848 = vmatmul.msk.f32.vlgmr.msrb.gmra.mxu0 %vm299_vm0, %v1236_v10  ;;  %843 = vmatmul.msk.f32.vlgmr.msrb.gmra.mxu1 %vm299_vm0, %v841_v29 }
  0x31   : > { %554 = vmatpush.msra.mxu0 %v871_v30  ;;  %525 = vmatpush.msra.mxu1 %v861_v31 }
  0x33   : > { %875 = vmatmul.msk.f32.vlgmr.msra.gmra.mxu2 %vm299_vm0, %v873_v32  ;;  %555 = vmatpush.msra.mxu0 %v870_v33 }
  0x34   : > { %880 = vmatmul.msk.f32.vlgmr.msra.gmra.mxu3 %vm299_vm0, %v1236_v10  ;;  %526 = vmatpush.msra.mxu1 %v860_v34 }
  0x35   : > { %556 = vmatpush.msra.mxu0 %v869_v35 }
  0x37   : > { %557 = vmatpush.msra.mxu0 %v868_v36 }
  0x38   : > { %872 = vmatmul.msk.f32.vlgmr.msra.gmra.mxu0 %vm299_vm0, %v1236_v10  ;;  %864 = vmatmul.msk.f32.vlgmr.msra.gmra.mxu1 %vm299_vm0, %v1236_v10 }
  0xa4   : > { %v320_v37 = vpop.f32.mrf.mxu0  ;;  %v344_v39 = vpop.f32.mrf.mxu1 }
  0xa5   : > { %372 = vst.msk [vmem:[%s1347_s18] sm:$0xff] %vm371_vm1, %v320_v37 }
  0xa6   : > { %v368_v38 = vpop.f32.mrf.mxu2  ;;  %373 = vst.msk [vmem:[%s279_s20] sm:$0xff] %vm371_vm1, %v344_v39 }
  0xa7   : > { %374 = vst.msk [vmem:[%s1351_s19] sm:$0xff] %vm371_vm1, %v368_v38  ;;  %v397_v40 = vpop.f32.mrf.mxu3 }
  0xa8   : > { %849 = vst.msk [vmem:[%s1347_s18 + $0x8] sm:$0xff] %vm371_vm1, %v397_v40 }
  0xad   : > { %v447_v41 = vpop.f32.mrf.mxu0  ;;  %v422_v43 = vpop.f32.mrf.mxu1 }
  0xae   : > { %v478_v42 = vpop.f32.mrf.mxu2  ;;  %851 = vst.msk [vmem:[%s1351_s19 + $0x8] sm:$0xff] %vm371_vm1, %v447_v41 }
  0xaf   : > { %865 = vst.msk [vmem:[%s1347_s18 + $0x10] sm:$0xff] %vm371_vm1, %v478_v42  ;;  %v503_v44 = vpop.f32.mrf.mxu3 }
  0xb0   : > { %850 = vst.msk [vmem:[%s279_s20 + $0x8] sm:$0xff] %vm371_vm1, %v422_v43 }
  0xb1   : > { %866 = vst.msk [vmem:[%s279_s20 + $0x10] sm:$0xff] %vm371_vm1, %v503_v44 }
  0xb5   : > { %v559_v45 = vpop.f32.mrf.mxu0  ;;  %v528_v47 = vpop.f32.mrf.mxu1 }
  0xb6   : > { %v584_v46 = vpop.f32.mrf.mxu2  ;;  %881 = vst.msk [vmem:[%s1347_s18 + $0x18] sm:$0xff] %vm371_vm1, %v559_v45 }
  0xb7   : > { %882 = vst.msk [vmem:[%s279_s20 + $0x18] sm:$0xff] %vm371_vm1, %v584_v46  ;;  %v609_v48 = vpop.f32.mrf.mxu3 }
  0xb8   : > { %867 = vst.msk [vmem:[%s1351_s19 + $0x10] sm:$0xff] %vm371_vm1, %v528_v47 }
  0xb9   : > { %883 = vst.msk [vmem:[%s1351_s19 + $0x18] sm:$0xff] %vm371_vm1, %v609_v48 }
  0xba   : > { %992 = shalt.err (!%p989_p5)
}
  0xbb   : > { %s1105_s19 = smov 128   ;;  %s1106_s13 = smov 8  }
  0xbc   : > { %899 = dma.vmem_to_hbm [thread:$0]  (%p1184_p4), %s1380_s11, 512, %s663_s3, %s624_s0, %s1105_s19, %s1105_s19, %s1106_s13  }
  0xbd   : > { %s1502_s17 = sand.u32 1, %s1087_s22   ;;  %s1007_s1 = sshra.s32 %s645_s27, 4  ;;  %s1008_s1 = int_to_ptr.hbm [resolvable:$true] %s1007_s1 }
  0xbe   : > { %s619_s24 = scalar_lea.sflag [#allocation3], %s1502_s17  ;;  %s1009_s2 = scalar_lea.hbm %s1008_s1, 32 }
  0xbf   : > { %p1010_p6 = scmp.ne.s32.totalorder %s1008_s1, %s1009_s2  ;;  %s1013_s30 = scalar_lea.hbm %s1487_s4, 64 }
  0xc0   : > { %p1014_p10 = scmp.lt.s32.totalorder %s1008_s1, %s1487_s4  ;;  %p1015_p11 = scmp.lt.s32.totalorder %s1013_s30, %s1009_s2 }
  0xc1   : > { %p1011_p7 = pnand %p1010_p6, %p1184_p4 }
  0xc2   : > { %p1016_p12 = por %p1015_p11, %p1014_p10 }
  0xc3   : > { %p1012_p9 = pneg %p1011_p7 }
  0xc5   : > { %p1017_p13 = pnand %p1016_p12, %p1012_p9 }
  0xc7   : > { %1020 = shalt.err (!%p1017_p13)
}
  0xc8   : > { %898 = dma.vmem_to_hbm [thread:$0]  (%p1184_p4), %s1392_s16, 512, %s645_s27, %s619_s24, %s1105_s19, %s1105_s19, %s1106_s13  }
  0xc9   : > { %s1035_s3 = sshra.s32 %s681_s28, 4  ;;  %s1041_s2 = scalar_lea.hbm %s1489_s6, 64  ;;  %s1036_s3 = int_to_ptr.hbm [resolvable:$true] %s1035_s3 }
  0xca   : > { %s1037_s11 = scalar_lea.hbm %s1036_s3, 32  ;;  %p1042_p3 = scmp.lt.s32.totalorder %s1036_s3, %s1489_s6 }
  0xcb   : > { %p1038_p0 = scmp.ne.s32.totalorder %s1036_s3, %s1037_s11  ;;  %p1043_p5 = scmp.lt.s32.totalorder %s1041_s2, %s1037_s11 }
  0xcd   : > { %p1039_p1 = pnand %p1038_p0, %p1184_p4  ;;  %p1044_p6 = por %p1043_p5, %p1042_p3 }
  0xcf   : > { %p1040_p2 = pneg %p1039_p1 }
  0xd1   : > { %p1045_p7 = pnand %p1044_p6, %p1040_p2 }
  0xd3   : > { %1048 = shalt.err (!%p1045_p7)
}
  0xd4   : > { %900 = dma.vmem_to_hbm [thread:$0]  (%p1184_p4), %s1397_s8, 512, %s681_s28, %s624_s0, %s1105_s19, %s1105_s19, %s1106_s13  }
  0xd5 PF: > { %p914_p9 = scmp.ge.s32.totalorder %s1103_s26, 2  ;;  %s695_s16 = sand.u32 1, %s1083_s21  }
  0xd6   : > { %s696_s27 = scalar_lea.sflag [#allocation3], %s695_s16 }
  0xd7   : > { %p905_p10 = pnand %p914_p9, %p1193_p8 }
  0xd9   : > { %p906_p11 = pneg %p905_p10 }
  0xdb   : > { %1074 = dma.done.wait (%p906_p11), %s696_s27, 512  }
  0xdc   : > { %1076 = vsyncadd (%p906_p11), %s696_s27, 4294966784  ;;  %s1503_s7 = sadd.s32 4294967294, %s1103_s26  }
  0xdd   : > { %s705_s24 = sand.u32 1, %s1503_s7  }
  0xde   : > { %s706_s15 = scalar_lea.sflag [#allocation5], %s705_s24 }
  0xdf   : > { %1078 = dma.done.wait (%p906_p11), %s706_s15, 1024  }
  0xe0   : > { %1080 = vsyncadd (%p906_p11), %s706_s15, 4294966272  ;;  %s23_s26 = sadd.s32 1, %s1103_s26   ;;  %s1504_s21 = smov %s1087_s22 }
  0xe1   : > { %p20_p4 = scmp.ge.s32.totalorder %s23_s26, 4   ;;  %s1505_s22 = smov %s1091_s23 }
  0xe2   : > { %s1506_s23 = smov %s1199_s10  ;;  %s1507_s24 = smov %s1099_s25 }
  0xe3   : > { %s1508_s25 = smov %s1510_s29  ;;  %22 = sbr.rel (!%p20_p4) target bundleno = 11 (0xb), region = 121 }
  0xe8   :  { %722 = vsyncpa [#allocation3], 1 }
  0xe9   :  { %724 = vsyncpa [#allocation3 + $0x1], 1 }
  0xea   :  { %725 = vsyncpa [#allocation5], 1 }
  0xeb   :  { %727 = vsyncpa [#allocation5 + $0x1], 1 }

</bundles_post_ra>
